<compile_context>
chip_gen: v7x
topology: tpu7x:2x2x1
jax: 0.10.0
libtpu: 0.0.40
codegen_flags: <defaults>
</compile_context>

<pallas_src>
import functools

import jax
import jax.numpy as jnp
from jax.experimental import pallas as pl
from jax.experimental.pallas import tpu as pltpu


def _conv_bn_relu_kernel(p_ref, w_ref, s_ref, b_ref, o_ref):
    # p_ref: (tm, K_pad)    bf16 im2col patch tile   (pipelined over M)
    # w_ref: (K_pad, N_pad) bf16 conv weights        (VMEM-resident)
    # s_ref: (1, N_pad)     f32 BN scale             (VMEM-resident)
    # b_ref: (1, N_pad)     f32 BN bias              (VMEM-resident)
    # o_ref: (tm, N_pad)    bf16 output tile (lane-dense, unmasked vst)
    acc = jnp.dot(p_ref[...], w_ref[...], preferred_element_type=jnp.float32)
    y = acc * s_ref[...] + b_ref[...]
    o_ref[...] = jnp.maximum(y, 0.0).astype(o_ref.dtype)


def _round_up(x, m):
    return ((x + m - 1) // m) * m


@functools.partial(jax.jit, static_argnames=("bn_eps",))
def conv3x3_branch(x_nchw, weight, gamma, beta, running_mean, running_var, *, bn_eps):
    """Forward pass of Conv3x3Branch (inference-mode BN with running stats)."""
    N, C, H, W = x_nchw.shape
    OC, IC, KH, KW = weight.shape
    assert IC == C and KH == 3 and KW == 3
    stride = 2
    OH = (H - KH) // stride + 1
    OW = (W - KW) // stride + 1

    M = N * OH * OW
    K = KH * KW * C
    K_pad = _round_up(K, 128)          # lane dim of the patch matrix
    N_pad = _round_up(OC, 128)         # lane dim of the output

    # --- glue (fused by XLA under jit): NCHW -> NHWC bf16, im2col emitted directly at K_pad ---
    x = jnp.transpose(x_nchw, (0, 2, 3, 1)).astype(jnp.bfloat16)   # NHWC, bf16 for the MXU
    cols = [x[:, i:i + stride * OH:stride, j:j + stride * OW:stride, :]
            for i in range(KH) for j in range(KW)]
    if K_pad > K:
        cols.append(jnp.zeros((N, OH, OW, K_pad - K), jnp.bfloat16))
    patches = jnp.concatenate(cols, axis=-1).reshape(M, K_pad)     # (M, K_pad) bf16

    # --- tiling: large tm, but always try for grid_m >= 2 so both v7x TCs get work ---
    tm_cap = 2048 if K_pad <= 256 else 1024
    tm = max(8, min(tm_cap, _round_up(-(-M // 2), 8)))
    M_pad = _round_up(M, tm)
    grid_m = M_pad // tm
    if M_pad > M:
        patches = jnp.pad(patches, ((0, M_pad - M), (0, 0)))   # tiny M-only pad (8-alignment)

    # --- BN folded to per-channel scale/bias, applied in f32 in the kernel epilogue ---
    scale = (gamma / jnp.sqrt(running_var + bn_eps)).astype(jnp.float32)   # (OC,)
    bias = (beta - running_mean * scale).astype(jnp.float32)               # (OC,)
    s_pad = jnp.pad(scale[None, :], ((0, 0), (0, N_pad - OC)))
    b_pad = jnp.pad(bias[None, :], ((0, 0), (0, N_pad - OC)))

    # weight (OC, IC, KH, KW) -> (KH*KW*IC, OC), matching the patch feature order
    w_mat = jnp.transpose(weight, (2, 3, 1, 0)).reshape(K, OC).astype(jnp.bfloat16)
    w_pad = jnp.pad(w_mat, ((0, K_pad - K), (0, N_pad - OC)))

    out = pl.pallas_call(
        _conv_bn_relu_kernel,
        out_shape=jax.ShapeDtypeStruct((M_pad, N_pad), jnp.bfloat16),
        grid=(grid_m,),
        in_specs=[
            pl.BlockSpec((tm, K_pad), lambda i: (i, 0)),      # patch tile, pipelined over M
            pl.BlockSpec((K_pad, N_pad), lambda i: (0, 0)),   # weights, VMEM-resident
            pl.BlockSpec((1, N_pad), lambda i: (0, 0)),       # BN scale, VMEM-resident
            pl.BlockSpec((1, N_pad), lambda i: (0, 0)),       # BN bias, VMEM-resident
        ],
        out_specs=pl.BlockSpec((tm, N_pad), lambda i: (i, 0)),
        compiler_params=pltpu.CompilerParams(
            dimension_semantics=("parallel",),
            vmem_limit_bytes=48 * 1024 * 1024,   # <= ~48 MiB: safe on v7x's 64 MiB VMEM
        ),
    )(patches, w_pad, s_pad, b_pad)

    # NOTE: if the downstream Inception layer consumes NHWC/bf16, return
    # out[:M, :OC].reshape(N, OH, OW, OC) directly and skip the transpose + f32 cast.
    y = out[:M, :OC].reshape(N, OH, OW, OC)
    return jnp.transpose(y, (0, 3, 1, 2)).astype(jnp.float32)   # NCHW, module output dtype


def _reference(x_nchw, weight, gamma, beta, running_mean, running_var, bn_eps):
    y = jax.lax.conv_general_dilated(
        x_nchw.astype(jnp.float32), weight.astype(jnp.float32),
        window_strides=(2, 2), padding="VALID",
        dimension_numbers=("NCHW", "OIHW", "NCHW"))
    scale = gamma / jnp.sqrt(running_var + bn_eps)
    bias = beta - running_mean * scale
    y = y * scale[None, :, None, None] + bias[None, :, None, None]
    return jnp.maximum(y, 0.0)


if __name__ == "__main__":
    key = jax.random.PRNGKey(0)
    k_x, k_w, k_g, k_b, k_m, k_v = jax.random.split(key, 6)

    N, C, H, W = 2, 4, 16, 16
    OC = 8
    bn_eps = 1e-5

    x = jax.random.normal(k_x, (N, C, H, W), dtype=jnp.float32)
    weight = jax.random.normal(k_w, (OC, C, 3, 3), dtype=jnp.float32) * 0.1
    gamma = jax.random.uniform(k_g, (OC,), minval=0.5, maxval=1.5, dtype=jnp.float32)
    beta = jax.random.normal(k_b, (OC,), dtype=jnp.float32) * 0.1
    running_mean = jax.random.normal(k_m, (OC,), dtype=jnp.float32) * 0.1
    running_var = jax.random.uniform(k_v, (OC,), minval=0.5, maxval=1.5, dtype=jnp.float32)

    out = conv3x3_branch(x, weight, gamma, beta, running_mean, running_var, bn_eps=bn_eps)
    out = jax.block_until_ready(out)

    ref = _reference(x, weight, gamma, beta, running_mean, running_var, bn_eps)
    assert out.shape == (N, OC, 7, 7), out.shape
    # bf16 MXU operands (f32 accumulation, f32 BN epilogue) -> loosened tolerance vs f32 ref.
    assert jnp.allclose(out, ref, atol=5e-2, rtol=5e-2), float(jnp.max(jnp.abs(out - ref)))

    print("KERNEL_OK")
</pallas_src>

<mosaic_0001>
module attributes {stable_mosaic.version = 11 : i64} {
  func.func @_conv_bn_relu_kernel(%arg0: i32, %arg1: memref<56x128xbf16, #tpu.memory_space<vmem>>, %arg2: memref<128x128xbf16, #tpu.memory_space<vmem>>, %arg3: memref<1x128xf32, #tpu.memory_space<vmem>>, %arg4: memref<1x128xf32, #tpu.memory_space<vmem>>, %arg5: memref<56x128xbf16, #tpu.memory_space<vmem>>) attributes {dimension_semantics = [#tpu.dimension_semantics<parallel>], iteration_bounds = array<i64: 2>, scalar_prefetch = 0 : i64, scratch_operands = 0 : i64, tpu.core_type = #tpu.core_type<tc>, window_params = [{transform_indices = @transform_0, window_bounds = array<i64: 56, 128>}, {pipeline_mode = #tpu.pipeline_mode<synchronous>, transform_indices = @transform_1, window_bounds = array<i64: 128, 128>}, {pipeline_mode = #tpu.pipeline_mode<synchronous>, transform_indices = @transform_2, window_bounds = array<i64: 1, 128>}, {pipeline_mode = #tpu.pipeline_mode<synchronous>, transform_indices = @transform_3, window_bounds = array<i64: 1, 128>}, {transform_indices = @transform_4, window_bounds = array<i64: 56, 128>}]} {
    %c0 = arith.constant 0 : index
    %c0_0 = arith.constant 0 : index
    %0 = vector.load %arg1[%c0, %c0_0] : memref<56x128xbf16, #tpu.memory_space<vmem>>, vector<56x128xbf16>
    %c0_1 = arith.constant 0 : index
    %c0_2 = arith.constant 0 : index
    %1 = vector.load %arg2[%c0_1, %c0_2] : memref<128x128xbf16, #tpu.memory_space<vmem>>, vector<128x128xbf16>
    %cst = arith.constant dense<0.000000e+00> : vector<56x128xf32>
    %2 = tpu.matmul %0, %1, %cst {dimension_numbers = #tpu.dot_dimension_numbers<[1], [0], [0], [1], [0, 0, 1, 1], [], []>} : vector<56x128xbf16>, vector<128x128xbf16>, vector<56x128xf32> -> vector<56x128xf32>
    %c0_3 = arith.constant 0 : index
    %c0_4 = arith.constant 0 : index
    %3 = vector.load %arg3[%c0_3, %c0_4] : memref<1x128xf32, #tpu.memory_space<vmem>>, vector<1x128xf32>
    %4 = vector.broadcast %3 : vector<1x128xf32> to vector<56x128xf32>
    %5 = arith.mulf %2, %4 : vector<56x128xf32>
    %c0_5 = arith.constant 0 : index
    %c0_6 = arith.constant 0 : index
    %6 = vector.load %arg4[%c0_5, %c0_6] : memref<1x128xf32, #tpu.memory_space<vmem>>, vector<1x128xf32>
    %7 = vector.broadcast %6 : vector<1x128xf32> to vector<56x128xf32>
    %8 = arith.addf %5, %7 : vector<56x128xf32>
    %cst_7 = arith.constant 0.000000e+00 : f32
    %9 = vector.broadcast %cst_7 : f32 to vector<56x128xf32>
    %10 = arith.maximumf %8, %9 : vector<56x128xf32>
    %11 = arith.truncf %10 : vector<56x128xf32> to vector<56x128xbf16>
    %c0_8 = arith.constant 0 : index
    %c0_9 = arith.constant 0 : index
    %12 = vector.load %arg5[%c0_8, %c0_9] : memref<56x128xbf16, #tpu.memory_space<vmem>>, vector<56x128xbf16>
    tpu.vector_store %arg5[%c0_8, %c0_9], %11 {strides = array<i32>} : memref<56x128xbf16, #tpu.memory_space<vmem>>, vector<56x128xbf16>,
    return
  }
  func.func @transform_0(%arg0: i32) -> (i32, i32) {
    %c0_i32 = arith.constant 0 : i32
    %c0_i32_0 = arith.constant 0 : i32
    return %arg0, %c0_i32 : i32, i32
  }
  func.func @transform_1(%arg0: i32) -> (i32, i32) {
    %c0_i32 = arith.constant 0 : i32
    %c0_i32_0 = arith.constant 0 : i32
    %c0_i32_1 = arith.constant 0 : i32
    return %c0_i32, %c0_i32_0 : i32, i32
  }
  func.func @transform_2(%arg0: i32) -> (i32, i32) {
    %c0_i32 = arith.constant 0 : i32
    %c0_i32_0 = arith.constant 0 : i32
    %c0_i32_1 = arith.constant 0 : i32
    return %c0_i32, %c0_i32_0 : i32, i32
  }
  func.func @transform_3(%arg0: i32) -> (i32, i32) {
    %c0_i32 = arith.constant 0 : i32
    %c0_i32_0 = arith.constant 0 : i32
    %c0_i32_1 = arith.constant 0 : i32
    return %c0_i32, %c0_i32_0 : i32, i32
  }
  func.func @transform_4(%arg0: i32) -> (i32, i32) {
    %c0_i32 = arith.constant 0 : i32
    %c0_i32_0 = arith.constant 0 : i32
    return %arg0, %c0_i32 : i32, i32
  }
}

</mosaic_0001>

<bundles_post_ra>
// kernel: conv3x3_branch.1
= control target key start
LH: loop header
LB: loop body
LE: loop exit
PB: predicated region body
PF: predicated region fallthrough
CT: control target
= control target key end

     0   :  { %s645_s15 = smov 0   ;;  %s705_s0 = inlined_call_operand.vmem [shape: bf16[112,128], index: 0, kind: input, shape index: {}]   ;;  %s706_s1 = inlined_call_operand.vmem [shape: bf16[128,128], index: 1, kind: input, shape index: {}]   ;;  %s707_s2 = inlined_call_operand.vmem [shape: f32[1,128], index: 2, kind: input, shape index: {}]   ;;  %s708_s3 = inlined_call_operand.vmem [shape: f32[1,128], index: 3, kind: input, shape index: {}]   ;;  %s709_s4 = inlined_call_operand.vmem [shape: bf16[112,128], index: 4, kind: output, shape index: {}]  }
   0x1 LB: > { %s486_s16 = sadd.s32 4294967295, %s618_s15   ;;  %p490_p0 = scmp.ge.s32.totalorder %s618_s15, 1  ;;  %s618_s15 = sphi %s645_s15, %s14_s15  }
   0x2   : > { %p163_p1 = scmp.lt.s32.totalorder %s618_s15, 3 }
   0x4   : > { %p164_p2 = pnand %p490_p0, %p163_p1 }
   0x5   : > { %v600_v0 = vld [vmem:[%s706_s1] sm:$0xff] (!%p164_p2)   ;;  %s189_s19 = smul.u32 (!%p164_p2), 7, %s486_s16  ;;  %v601_v1 = vld [vmem:[%s706_s1 + $0x8] sm:$0xff] (!%p164_p2)   ;;  %v602_v2 = vld [vmem:[%s706_s1 + $0x10] sm:$0xff] (!%p164_p2)  }
   0x6   : > { %167 = sbr.rel (%p164_p2) target bundleno = 262 (0x106), region = 36  ;;  %552 = vmatprep.subr.bf16.mxu0 (!%p164_p2), %v600_v0  ;;  %576 = vmatprep.subr.bf16.mxu1 (!%p164_p2), %v600_v0  ;;  %v603_v3 = vld [vmem:[%s706_s1 + $0x18] sm:$0xff] (!%p164_p2)   ;;  %v604_v6 = vld [vmem:[%s706_s1 + $0x20] sm:$0xff] (!%p164_p2)   ;;  %v605_v7 = vld [vmem:[%s706_s1 + $0x28] sm:$0xff] (!%p164_p2)  }
   0x7   : > { %p190_p3 = scmp.lt.s32.totalorder (!%p164_p2), %s189_s19, 13  ;;  %553 = vmatpush3.bf16.msra.mxu0 (!%p164_p2), %v600_v0  ;;  %584 = vmatpush3.bf16.msra.mxu1 (!%p164_p2), %v600_v0  ;;  %v606_v8 = vld [vmem:[%s706_s1 + $0x30] sm:$0xff] (!%p164_p2)   ;;  %v607_v9 = vld [vmem:[%s706_s1 + $0x38] sm:$0xff] (!%p164_p2)   ;;  %v505_v12 = vld [vmem:[%s707_s2] ss:$0 sm:$0xff] (!%p164_p2) }
   0x8   : > { %554 = vmatprep.subr.bf16.mxu0 (!%p164_p2), %v601_v1  ;;  %577 = vmatprep.subr.bf16.mxu1 (!%p164_p2), %v601_v1  ;;  %v506_v14 = vld [vmem:[%s708_s3] ss:$0 sm:$0xff] (!%p164_p2) }
   0xb   : > { %555 = vmatpush3.bf16.msra.mxu0 (!%p164_p2), %v601_v1  ;;  %585 = vmatpush3.bf16.msra.mxu1 (!%p164_p2), %v601_v1 }
   0xc   : > { %556 = vmatprep.subr.bf16.mxu0 (!%p164_p2), %v602_v2  ;;  %578 = vmatprep.subr.bf16.mxu1 (!%p164_p2), %v602_v2 }
   0xd   : > { %s711_s19 = smov (!%p190_p3, %s189_s19), 13 }
   0xe   : > { %s491_s24 = sshll.u32 %s711_s19, 2 }
   0xf   : > { %s673_s29 = scalar_lea.vmem %s705_s0, %s491_s24  ;;  %557 = vmatpush3.bf16.msra.mxu0 %v602_v2  ;;  %586 = vmatpush3.bf16.msra.mxu1 %v602_v2  ;;  %s199_s20 = scalar_lea.vmem %s709_s4, %s491_s24 }
  0x10   : > { %v608_v4 = vld [vmem:[%s673_s29] sm:$0xff]   ;;  %v609_v5 = vld [vmem:[%s673_s29 + $0x10] sm:$0xff]   ;;  %558 = vmatprep.subr.bf16.mxu0 %v603_v3  ;;  %579 = vmatprep.subr.bf16.mxu1 %v603_v3  ;;  %v610_v10 = vld [vmem:[%s673_s29 + $0x8] sm:$0xff]  }
  0x11   : > { %568 = vmatprep.mubr.bf16.mxu0 %v608_v4  ;;  %572 = vmatprep.mubr.bf16.mxu1 %v609_v5  ;;  %v611_v11 = vld [vmem:[%s673_s29 + $0x18] ss:$0 sps:$4 sm:$0xff]  }
  0x13   : > { %559 = vmatpush3.bf16.msra.mxu0 %v603_v3  ;;  %587 = vmatpush3.bf16.msra.mxu1 %v603_v3 }
  0x14   : > { %560 = vmatprep.subr.bf16.mxu0 %v604_v6  ;;  %580 = vmatprep.subr.bf16.mxu1 %v604_v6 }
  0x17   : > { %561 = vmatpush3.bf16.msra.mxu0 %v604_v6  ;;  %588 = vmatpush3.bf16.msra.mxu1 %v604_v6 }
  0x18   : > { %562 = vmatprep.subr.bf16.mxu0 %v605_v7  ;;  %581 = vmatprep.subr.bf16.mxu1 %v605_v7 }
  0x1b   : > { %563 = vmatpush3.bf16.msra.mxu0 %v605_v7  ;;  %589 = vmatpush3.bf16.msra.mxu1 %v605_v7 }
  0x1c   : > { %564 = vmatprep.subr.bf16.mxu0 %v606_v8  ;;  %582 = vmatprep.subr.bf16.mxu1 %v606_v8 }
  0x1f   : > { %565 = vmatpush3.bf16.msra.mxu0 %v606_v8  ;;  %590 = vmatpush3.bf16.msra.mxu1 %v606_v8 }
  0x20   : > { %566 = vmatprep.subr.bf16.mxu0 %v607_v9  ;;  %583 = vmatprep.subr.bf16.mxu1 %v607_v9 }
  0x23   : > { %567 = vmatpush3.bf16.msra.mxu0 %v607_v9  ;;  %591 = vmatpush3.bf16.msra.mxu1 %v607_v9 }
  0x26   : > { %569 = vmatmul.mubr.bf16.vlgmr.msra.gmra.mrb[0].mxu0 %v610_v10  ;;  %573 = vmatmul.mubr.bf16.vlgmr.msra.gmra.mrb[0].mxu1 %v611_v11 }
  0xf9   : > { %v570_v13 = vpop.f32.mrb[0].mxu0  ;;  %v574_v15 = vpop.f32.mrb[0].mxu1 }
  0xfa   : > { %v368_v16 = vmul.f32 %v570_v13, %v505_v12  ;;  %v372_v17 = vmul.f32 %v574_v15, %v505_v12  ;;  %v329_v18 = vpop.f32.mrb[1].mxu0  ;;  %v345_v19 = vpop.f32.mrb[1].mxu1 }
  0xfb   : > { %v366_v20 = vmul.f32 %v505_v12, %v329_v18  ;;  %v370_v21 = vmul.f32 %v505_v12, %v345_v19  ;;  %v571_v22 = vpop.f32.mrb[2].mxu0  ;;  %v575_v23 = vpop.f32.mrb[2].mxu1 }
  0xfc   : > { %v382_v24 = vadd.f32 %v506_v14, %v368_v16  ;;  %v386_v25 = vadd.f32 %v506_v14, %v372_v17  ;;  %v369_v26 = vmul.f32 %v571_v22, %v505_v12  ;;  %v332_v27 = vpop.f32.mrb[3].mxu0  ;;  %v348_v28 = vpop.f32.mrb[3].mxu1 }
  0xfd   : > { %v380_v29 = vadd.f32 %v506_v14, %v366_v20  ;;  %v384_v30 = vadd.f32 %v506_v14, %v370_v21  ;;  %v367_v31 = vmul.f32 %v505_v12, %v332_v27  ;;  %v371_v32 = vmul.f32 %v505_v12, %v348_v28 }
  0xfe   : > { %v393_v33 = vmax.f32 %v386_v25, 0.0  ;;  %v383_v34 = vadd.f32 %v506_v14, %v369_v26  ;;  %v389_v37 = vmax.f32 %v382_v24, 0.0 }
  0xff   : > { %v381_v35 = vadd.f32 %v506_v14, %v367_v31  ;;  %v385_v36 = vadd.f32 %v506_v14, %v371_v32  ;;  %v387_v40 = vmax.f32 %v380_v29, 0.0  ;;  %v391_v41 = vmax.f32 %v384_v30, 0.0 }
 0x100   : > { %v522_v38 = vpack.c.bf16 %v393_v33, %v393_v33  ;;  %v390_v39 = vmax.f32 %v383_v34, 0.0 }
 0x101   : > { %v388_v42 = vmax.f32 %v381_v35, 0.0  ;;  %v392_v43 = vmax.f32 %v385_v36, 0.0 }
 0x102   : > { %429 = vst [vmem:[%s199_s20 + $0x18] sm:$0xf] %v522_v38  ;;  %v531_v44 = vpack.c.bf16 %v390_v39, %v389_v37 }
 0x103   : > { %v526_v45 = vpack.c.bf16 %v388_v42, %v387_v40  ;;  %v536_v46 = vpack.c.bf16 %v392_v43, %v391_v41 }
 0x104   : > { %538 = vst [vmem:[%s199_s20 + $0x8] sm:$0xff] %v531_v44  }
 0x105   : > { %527 = vst [vmem:[%s199_s20] sm:$0xff] %v526_v45   ;;  %539 = vst [vmem:[%s199_s20 + $0x10] sm:$0xff] %v536_v46  }
 0x106 PF: > { %s14_s15 = sadd.s32 1, %s618_s15  }
 0x107   : > { %p11_p4 = scmp.ge.s32.totalorder %s14_s15, 4  }
 0x109   :  { %13 = sbr.rel (!%p11_p4) target bundleno = 1 (0x1), region = 66 }

</bundles_post_ra>
